<compile_context>
chip_gen: v5e
topology: v5e:2x2
jax: 0.10.0
libtpu: 0.0.40
codegen_flags: <defaults>
</compile_context>

<pallas_src>
import math

import numpy as np
import jax
import jax.numpy as jnp
from jax.experimental import pallas as pl
from jax.experimental.pallas import tpu as pltpu


def make_divisible(x, divisible_by=8):
    return int(np.ceil(x * 1.0 / divisible_by) * divisible_by)


def _fold_bn(bn, eps=1e-5):
    """BN(y) = y*scale + shift (inference mode, running stats)."""
    gamma, beta, mean, var = bn
    scale = gamma / jnp.sqrt(var + eps)
    shift = beta - mean * scale
    return scale, shift


def _tensorcores_per_chip():
    """Best-effort TC-per-device count: 2 on v7x / v4 megacore, else 1."""
    try:
        kind = jax.devices()[0].device_kind.lower()
    except Exception:
        return 1
    if any(tag in kind for tag in ("v7", "tpu7", "v4")):
        return 2
    return 1


def inverted_residual_v3_forward(x, prm):
    """x: (B, inp, H, W) f32 -> (B, oup, H, W) f32."""
    B, inp, H, W = x.shape
    hidden = prm["w_exp"].shape[0]
    oup = prm["w_proj"].shape[0]
    mid = prm["w_fc1"].shape[0]
    K = prm["w_dw"].shape[-1]
    HW = H * W
    pad = (K - 1) // 2
    assert inp == oup, "identity residual path only (stride=1, inp==oup)"
    assert inp != hidden, "expand path only (inp != hidden_dim)"

    # Batch blocking: single grid step on 1-TC chips (v5e/v6e), per-image on dual-TC.
    bb = 1 if (_tensorcores_per_chip() >= 2 and B > 1) else B
    grid = (B // bb,)

    Cp = max(8, make_divisible(max(inp, oup), 8))          # sublane-aligned in/out chans

    # ---- fold BatchNorm (inference) into the bias-free convs (wrapper-side) ----
    s1, t1 = _fold_bn(prm["bn1"])
    s2, t2 = _fold_bn(prm["bn2"])
    s3, t3 = _fold_bn(prm["bn3"])

    eye = jnp.eye(bb, dtype=jnp.float32)

    # expand 1x1 (BN1 folded), input channels padded to Cp, block-diag over batch
    w1 = prm["w_exp"][:, :, 0, 0] * s1[:, None]                       # (hidden, inp)
    if Cp > inp:
        w1 = jnp.concatenate([w1, jnp.zeros((hidden, Cp - inp), jnp.float32)], axis=1)
    w1_bd = jnp.kron(eye, w1)                                         # (bb*hidden, bb*Cp)

    # project 1x1 (BN3 folded), output channels padded to Cp, block-diag over batch
    w3 = prm["w_proj"][:, :, 0, 0] * s3[:, None]                      # (oup, hidden)
    if Cp > oup:
        w3 = jnp.concatenate([w3, jnp.zeros((Cp - oup, hidden), jnp.float32)], axis=0)
    w3_bd = jnp.kron(eye, w3)                                         # (bb*Cp, bb*hidden)

    # SE FCs, block-diag over batch
    wfc1_bd = jnp.kron(eye, prm["w_fc1"])                             # (bb*mid, bb*hidden)
    wfc2_bd = jnp.kron(eye, prm["w_fc2"])                             # (bb*hidden, bb*mid)

    # depthwise taps: fold BN2 scale AND the zero-padding validity mask into the weights
    wdw = prm["w_dw"][:, 0, :, :] * s2[:, None, None]                 # (hidden, K, K)
    hh = np.arange(HW) // W
    ww = np.arange(HW) % W
    center = pad * K + pad
    taps = []                                   # (tap index, static lane shift), no centre
    wm_rows = []
    for kh in range(K):
        for kw in range(K):
            dho, dwo = kh - pad, kw - pad
            valid = ((hh + dho >= 0) & (hh + dho < H) &
                     (ww + dwo >= 0) & (ww + dwo < W)).astype(np.float32)
            wm_rows.append(wdw[:, kh, kw][:, None] * jnp.asarray(valid)[None, :])
            k = kh * K + kw
            if k != center:
                taps.append((k, int((-(dho * W + dwo)) % HW)))
    wm = jnp.tile(jnp.stack(wm_rows), (1, bb, 1))                     # (K*K, bb*hidden, HW)

    # biases (per-row, broadcast over lanes), packed into ONE (N, 1) operand
    t3p = jnp.zeros((Cp,), jnp.float32).at[:oup].set(t3)
    segs = [t1, t2, prm["b_fc1"], prm["b_fc2"], t3p]
    sizes = [bb * int(s.shape[0]) for s in segs]
    offs = [0] + [int(v) for v in np.cumsum(sizes[:-1])]
    sl_b1, sl_b2, sl_fc1, sl_fc2, sl_b3 = (
        slice(o, o + n) for o, n in zip(offs, sizes))
    bias_pack = jnp.concatenate([jnp.tile(s, (bb,)) for s in segs])[:, None]   # (N, 1)

    # x: pad channels to Cp, flatten to (B*Cp, HW) -- batch lives in the sublane axis
    xp = jnp.zeros((B, Cp, HW), jnp.float32).at[:, :inp, :].set(x.reshape(B, inp, HW))
    x_flat = xp.reshape(B * Cp, HW)
    rows = bb * Cp

    def kernel(x_ref, w1_ref, wm_ref, bias_ref, wfc1_ref, wfc2_ref, w3_ref, o_ref):
        x_b = x_ref[...]                                              # (bb*Cp, HW)

        # 1) expand 1x1 conv (BN folded) + h_swish, on the MXU
        y = jnp.dot(w1_ref[...], x_b, preferred_element_type=jnp.float32)
        y = y + bias_ref[sl_b1, :]
        y = y * (jnp.clip(y + 3.0, 0.0, 6.0) * (1.0 / 6.0))

        # 2) depthwise KxK, stride 1, zero 'same' pad:
        #    each tap = lane roll (XLU) * (weight*mask folded host-side)
        acc = wm_ref[center] * y                                      # centre tap, shift 0
        for k, sh in taps:                                            # 8 static taps
            acc = acc + wm_ref[k] * pltpu.roll(y, sh, 1)
        d = acc + bias_ref[sl_b2, :]                                  # BN2 shift

        # 3) SE: global average pool -> FC -> ReLU -> FC -> h_sigmoid -> rescale
        pooled = jnp.mean(d, axis=-1, keepdims=True)                  # (bb*hidden, 1)
        z = jnp.dot(wfc1_ref[...], pooled,
                    preferred_element_type=jnp.float32) + bias_ref[sl_fc1, :]
        z = jnp.maximum(z, 0.0)
        se = jnp.dot(wfc2_ref[...], z,
                     preferred_element_type=jnp.float32) + bias_ref[sl_fc2, :]
        se = jnp.clip(se + 3.0, 0.0, 6.0) * (1.0 / 6.0)               # h_sigmoid
        d = d * se

        # 4) h_swish
        d = d * (jnp.clip(d + 3.0, 0.0, 6.0) * (1.0 / 6.0))

        # 5) project 1x1 conv (BN folded) + identity residual
        out = jnp.dot(w3_ref[...], d,
                      preferred_element_type=jnp.float32) + bias_ref[sl_b3, :]
        o_ref[...] = out + x_b

    def full(a):
        nd = a.ndim
        return pl.BlockSpec(a.shape, lambda b, _nd=nd: (0,) * _nd)

    out_flat = pl.pallas_call(
        kernel,
        out_shape=jax.ShapeDtypeStruct((B * Cp, HW), jnp.float32),
        grid_spec=pltpu.PrefetchScalarGridSpec(
            num_scalar_prefetch=0,
            grid=grid,
            in_specs=[
                pl.BlockSpec((rows, HW), lambda b: (b, 0)),           # x (per-step block)
                full(w1_bd), full(wm), full(bias_pack),
                full(wfc1_bd), full(wfc2_bd), full(w3_bd),
            ],
            out_specs=pl.BlockSpec((rows, HW), lambda b: (b, 0)),
        ),
        compiler_params=pltpu.CompilerParams(dimension_semantics=("parallel",)),
    )(x_flat, w1_bd, wm, bias_pack, wfc1_bd, wfc2_bd, w3_bd)

    return out_flat.reshape(B, Cp, HW)[:, :oup, :].reshape(B, oup, H, W)


def _reference(x, prm):
    """Pure-JAX reference matching the PyTorch forward (eval-mode BatchNorm)."""
    P = jax.lax.Precision.HIGHEST
    eps = 1e-5
    hswish = lambda v: v * jnp.clip(v + 3.0, 0.0, 6.0) / 6.0
    hsig = lambda v: jnp.clip(v + 3.0, 0.0, 6.0) / 6.0

    def bn(v, p):
        g, b, m, var = p
        inv = g / jnp.sqrt(var + eps)
        return v * inv[None, :, None, None] + (b - m * inv)[None, :, None, None]

    y = jax.lax.conv_general_dilated(
        x, prm["w_exp"], (1, 1), "VALID",
        dimension_numbers=("NCHW", "OIHW", "NCHW"), precision=P)
    y = hswish(bn(y, prm["bn1"]))
    d = jax.lax.conv_general_dilated(
        y, prm["w_dw"], (1, 1), ((1, 1), (1, 1)),
        dimension_numbers=("NCHW", "OIHW", "NCHW"),
        feature_group_count=y.shape[1], precision=P)
    d = bn(d, prm["bn2"])
    pooled = d.mean(axis=(2, 3))
    z = jnp.maximum(jnp.dot(pooled, prm["w_fc1"].T, precision=P) + prm["b_fc1"], 0.0)
    s = hsig(jnp.dot(z, prm["w_fc2"].T, precision=P) + prm["b_fc2"])
    d = hswish(d * s[:, :, None, None])
    o = jax.lax.conv_general_dilated(
        d, prm["w_proj"], (1, 1), "VALID",
        dimension_numbers=("NCHW", "OIHW", "NCHW"), precision=P)
    return x + bn(o, prm["bn3"])


if __name__ == "__main__":
    # InvertedResidualv3(inp=4, hidden_dim=8, oup=4, kernel_size=3, stride=1,
    #                    use_se=True, use_hs=True) on a (2, 4, 16, 16) input.
    B, inp, H, W = 2, 4, 16, 16
    hidden, oup, K = 8, 4, 3
    mid = make_divisible(hidden // 4, 8)          # SE bottleneck width = 8

    key = jax.random.PRNGKey(0)
    ks = jax.random.split(key, 12)

    def unif(k, shape, bound):
        return jax.random.uniform(k, shape, jnp.float32, -bound, bound)

    def bn_params(k, c):
        k1, k2, k3, k4 = jax.random.split(k, 4)
        gamma = jax.random.uniform(k1, (c,), jnp.float32, 0.5, 1.5)
        beta = 0.1 * jax.random.normal(k2, (c,), jnp.float32)
        mean = 0.1 * jax.random.normal(k3, (c,), jnp.float32)
        var = jax.random.uniform(k4, (c,), jnp.float32, 0.5, 1.5)
        return gamma, beta, mean, var

    x = jax.random.normal(ks[0], (B, inp, H, W), dtype=jnp.float32)

    prm = {
        "w_exp": unif(ks[1], (hidden, inp, 1, 1), 1.0 / math.sqrt(inp)),
        "w_dw": unif(ks[2], (hidden, 1, K, K), 1.0 / math.sqrt(K * K)),
        "w_proj": unif(ks[3], (oup, hidden, 1, 1), 1.0 / math.sqrt(hidden)),
        "w_fc1": unif(ks[4], (mid, hidden), 1.0 / math.sqrt(hidden)),
        "b_fc1": unif(ks[5], (mid,), 1.0 / math.sqrt(hidden)),
        "w_fc2": unif(ks[6], (hidden, mid), 1.0 / math.sqrt(mid)),
        "b_fc2": unif(ks[7], (hidden,), 1.0 / math.sqrt(mid)),
        "bn1": bn_params(ks[8], hidden),
        "bn2": bn_params(ks[9], hidden),
        "bn3": bn_params(ks[10], oup),
    }

    out = jax.block_until_ready(inverted_residual_v3_forward(x, prm))
    ref = jax.block_until_ready(_reference(x, prm))

    assert out.shape == ref.shape == (B, oup, H, W), (out.shape, ref.shape)
    max_err = float(jnp.max(jnp.abs(out - ref)))
    assert jnp.allclose(out, ref, atol=1e-3, rtol=1e-3), f"max_abs_err={max_err}"
    print("KERNEL_OK")
</pallas_src>

<mosaic_0001>
module attributes {stable_mosaic.version = 11 : i64} {
  func.func @kernel(%arg0: i32, %arg1: memref<16x256xf32, #tpu.memory_space<vmem>>, %arg2: memref<16x16xf32, #tpu.memory_space<vmem>>, %arg3: memref<9x16x256xf32, #tpu.memory_space<vmem>>, %arg4: memref<80x1xf32, #tpu.memory_space<vmem>>, %arg5: memref<16x16xf32, #tpu.memory_space<vmem>>, %arg6: memref<16x16xf32, #tpu.memory_space<vmem>>, %arg7: memref<16x16xf32, #tpu.memory_space<vmem>>, %arg8: memref<16x256xf32, #tpu.memory_space<vmem>>) attributes {dimension_semantics = [#tpu.dimension_semantics<parallel>], iteration_bounds = array<i64: 1>, scalar_prefetch = 0 : i64, scratch_operands = 0 : i64, tpu.core_type = #tpu.core_type<tc>, window_params = [{transform_indices = @transform_0, window_bounds = array<i64: 16, 256>}, {pipeline_mode = #tpu.pipeline_mode<synchronous>, transform_indices = @transform_1, window_bounds = array<i64: 16, 16>}, {pipeline_mode = #tpu.pipeline_mode<synchronous>, transform_indices = @transform_2, window_bounds = array<i64: 9, 16, 256>}, {pipeline_mode = #tpu.pipeline_mode<synchronous>, transform_indices = @transform_3, window_bounds = array<i64: 80, 1>}, {pipeline_mode = #tpu.pipeline_mode<synchronous>, transform_indices = @transform_4, window_bounds = array<i64: 16, 16>}, {pipeline_mode = #tpu.pipeline_mode<synchronous>, transform_indices = @transform_5, window_bounds = array<i64: 16, 16>}, {pipeline_mode = #tpu.pipeline_mode<synchronous>, transform_indices = @transform_6, window_bounds = array<i64: 16, 16>}, {transform_indices = @transform_7, window_bounds = array<i64: 16, 256>}]} {
    %c0 = arith.constant 0 : index
    %c0_0 = arith.constant 0 : index
    %0 = vector.load %arg1[%c0, %c0_0] : memref<16x256xf32, #tpu.memory_space<vmem>>, vector<16x256xf32>
    %c0_1 = arith.constant 0 : index
    %c0_2 = arith.constant 0 : index
    %1 = vector.load %arg2[%c0_1, %c0_2] : memref<16x16xf32, #tpu.memory_space<vmem>>, vector<16x16xf32>
    %cst = arith.constant dense<0.000000e+00> : vector<16x256xf32>
    %2 = tpu.matmul %1, %0, %cst {dimension_numbers = #tpu.dot_dimension_numbers<[1], [0], [0], [1], [0, 0, 1, 1], [], []>} : vector<16x16xf32>, vector<16x256xf32>, vector<16x256xf32> -> vector<16x256xf32>
    %c0_3 = arith.constant 0 : index
    %c0_4 = arith.constant 0 : index
    %3 = vector.load %arg4[%c0_3, %c0_4] : memref<80x1xf32, #tpu.memory_space<vmem>>, vector<16x1xf32>
    %4 = vector.broadcast %3 : vector<16x1xf32> to vector<16x256xf32>
    %5 = arith.addf %2, %4 : vector<16x256xf32>
    %cst_5 = arith.constant 3.000000e+00 : f32
    %6 = vector.broadcast %cst_5 : f32 to vector<16x256xf32>
    %7 = arith.addf %5, %6 : vector<16x256xf32>
    %cst_6 = arith.constant 0.000000e+00 : f32
    %cst_7 = arith.constant 6.000000e+00 : f32
    %8 = vector.broadcast %cst_6 : f32 to vector<16x256xf32>
    %9 = arith.maximumf %8, %7 : vector<16x256xf32>
    %10 = vector.broadcast %cst_7 : f32 to vector<16x256xf32>
    %11 = arith.minimumf %10, %9 : vector<16x256xf32>
    %cst_8 = arith.constant 0.166666672 : f32
    %12 = vector.broadcast %cst_8 : f32 to vector<16x256xf32>
    %13 = arith.mulf %11, %12 : vector<16x256xf32>
    %14 = arith.mulf %5, %13 : vector<16x256xf32>
    %c4 = arith.constant 4 : index
    %c0_9 = arith.constant 0 : index
    %c0_10 = arith.constant 0 : index
    %15 = vector.load %arg3[%c4, %c0_9, %c0_10] : memref<9x16x256xf32, #tpu.memory_space<vmem>>, vector<1x16x256xf32>
    %16 = vector.shape_cast %15 : vector<1x16x256xf32> to vector<16x256xf32>
    %17 = arith.mulf %16, %14 : vector<16x256xf32>
    %c0_11 = arith.constant 0 : index
    %c0_12 = arith.constant 0 : index
    %c0_13 = arith.constant 0 : index
    %18 = vector.load %arg3[%c0_11, %c0_12, %c0_13] : memref<9x16x256xf32, #tpu.memory_space<vmem>>, vector<1x16x256xf32>
    %19 = vector.shape_cast %18 : vector<1x16x256xf32> to vector<16x256xf32>
    %c17_i32 = arith.constant 17 : i32
    %20 = tpu.dynamic_rotate %14 by %c17_i32 dim 1 : vector<16x256xf32>, i32 -> vector<16x256xf32>
    %21 = arith.mulf %19, %20 : vector<16x256xf32>
    %22 = arith.addf %17, %21 : vector<16x256xf32>
    %c1 = arith.constant 1 : index
    %c0_14 = arith.constant 0 : index
    %c0_15 = arith.constant 0 : index
    %23 = vector.load %arg3[%c1, %c0_14, %c0_15] : memref<9x16x256xf32, #tpu.memory_space<vmem>>, vector<1x16x256xf32>
    %24 = vector.shape_cast %23 : vector<1x16x256xf32> to vector<16x256xf32>
    %c16_i32 = arith.constant 16 : i32
    %25 = tpu.dynamic_rotate %14 by %c16_i32 dim 1 : vector<16x256xf32>, i32 -> vector<16x256xf32>
    %26 = arith.mulf %24, %25 : vector<16x256xf32>
    %27 = arith.addf %22, %26 : vector<16x256xf32>
    %c2 = arith.constant 2 : index
    %c0_16 = arith.constant 0 : index
    %c0_17 = arith.constant 0 : index
    %28 = vector.load %arg3[%c2, %c0_16, %c0_17] : memref<9x16x256xf32, #tpu.memory_space<vmem>>, vector<1x16x256xf32>
    %29 = vector.shape_cast %28 : vector<1x16x256xf32> to vector<16x256xf32>
    %c15_i32 = arith.constant 15 : i32
    %30 = tpu.dynamic_rotate %14 by %c15_i32 dim 1 : vector<16x256xf32>, i32 -> vector<16x256xf32>
    %31 = arith.mulf %29, %30 : vector<16x256xf32>
    %32 = arith.addf %27, %31 : vector<16x256xf32>
    %c3 = arith.constant 3 : index
    %c0_18 = arith.constant 0 : index
    %c0_19 = arith.constant 0 : index
    %33 = vector.load %arg3[%c3, %c0_18, %c0_19] : memref<9x16x256xf32, #tpu.memory_space<vmem>>, vector<1x16x256xf32>
    %34 = vector.shape_cast %33 : vector<1x16x256xf32> to vector<16x256xf32>
    %c1_i32 = arith.constant 1 : i32
    %35 = tpu.dynamic_rotate %14 by %c1_i32 dim 1 : vector<16x256xf32>, i32 -> vector<16x256xf32>
    %36 = arith.mulf %34, %35 : vector<16x256xf32>
    %37 = arith.addf %32, %36 : vector<16x256xf32>
    %c5 = arith.constant 5 : index
    %c0_20 = arith.constant 0 : index
    %c0_21 = arith.constant 0 : index
    %38 = vector.load %arg3[%c5, %c0_20, %c0_21] : memref<9x16x256xf32, #tpu.memory_space<vmem>>, vector<1x16x256xf32>
    %39 = vector.shape_cast %38 : vector<1x16x256xf32> to vector<16x256xf32>
    %c255_i32 = arith.constant 255 : i32
    %40 = tpu.dynamic_rotate %14 by %c255_i32 dim 1 : vector<16x256xf32>, i32 -> vector<16x256xf32>
    %41 = arith.mulf %39, %40 : vector<16x256xf32>
    %42 = arith.addf %37, %41 : vector<16x256xf32>
    %c6 = arith.constant 6 : index
    %c0_22 = arith.constant 0 : index
    %c0_23 = arith.constant 0 : index
    %43 = vector.load %arg3[%c6, %c0_22, %c0_23] : memref<9x16x256xf32, #tpu.memory_space<vmem>>, vector<1x16x256xf32>
    %44 = vector.shape_cast %43 : vector<1x16x256xf32> to vector<16x256xf32>
    %c241_i32 = arith.constant 241 : i32
    %45 = tpu.dynamic_rotate %14 by %c241_i32 dim 1 : vector<16x256xf32>, i32 -> vector<16x256xf32>
    %46 = arith.mulf %44, %45 : vector<16x256xf32>
    %47 = arith.addf %42, %46 : vector<16x256xf32>
    %c7 = arith.constant 7 : index
    %c0_24 = arith.constant 0 : index
    %c0_25 = arith.constant 0 : index
    %48 = vector.load %arg3[%c7, %c0_24, %c0_25] : memref<9x16x256xf32, #tpu.memory_space<vmem>>, vector<1x16x256xf32>
    %49 = vector.shape_cast %48 : vector<1x16x256xf32> to vector<16x256xf32>
    %c240_i32 = arith.constant 240 : i32
    %50 = tpu.dynamic_rotate %14 by %c240_i32 dim 1 : vector<16x256xf32>, i32 -> vector<16x256xf32>
    %51 = arith.mulf %49, %50 : vector<16x256xf32>
    %52 = arith.addf %47, %51 : vector<16x256xf32>
    %c8 = arith.constant 8 : index
    %c0_26 = arith.constant 0 : index
    %c0_27 = arith.constant 0 : index
    %53 = vector.load %arg3[%c8, %c0_26, %c0_27] : memref<9x16x256xf32, #tpu.memory_space<vmem>>, vector<1x16x256xf32>
    %54 = vector.shape_cast %53 : vector<1x16x256xf32> to vector<16x256xf32>
    %c239_i32 = arith.constant 239 : i32
    %55 = tpu.dynamic_rotate %14 by %c239_i32 dim 1 : vector<16x256xf32>, i32 -> vector<16x256xf32>
    %56 = arith.mulf %54, %55 : vector<16x256xf32>
    %57 = arith.addf %52, %56 : vector<16x256xf32>
    %c16 = arith.constant 16 : index
    %c0_28 = arith.constant 0 : index
    %58 = vector.load %arg4[%c16, %c0_28] : memref<80x1xf32, #tpu.memory_space<vmem>>, vector<16x1xf32>
    %59 = vector.broadcast %58 : vector<16x1xf32> to vector<16x256xf32>
    %60 = arith.addf %57, %59 : vector<16x256xf32>
    %cst_29 = arith.constant dense<0.000000e+00> : vector<16xf32>
    %61 = vector.multi_reduction <add>, %60, %cst_29 [1] : vector<16x256xf32> to vector<16xf32>
    %62 = vector.shape_cast %61 : vector<16xf32> to vector<16x1xf32>
    %cst_30 = arith.constant 2.560000e+02 : f32
    %63 = vector.broadcast %cst_30 : f32 to vector<16x1xf32>
    %64 = arith.divf %62, %63 : vector<16x1xf32>
    %c0_31 = arith.constant 0 : index
    %c0_32 = arith.constant 0 : index
    %65 = vector.load %arg5[%c0_31, %c0_32] : memref<16x16xf32, #tpu.memory_space<vmem>>, vector<16x16xf32>
    %cst_33 = arith.constant dense<0.000000e+00> : vector<16x1xf32>
    %66 = tpu.matmul %65, %64, %cst_33 {dimension_numbers = #tpu.dot_dimension_numbers<[1], [0], [0], [1], [0, 0, 1, 1], [], []>} : vector<16x16xf32>, vector<16x1xf32>, vector<16x1xf32> -> vector<16x1xf32>
    %c32 = arith.constant 32 : index
    %c0_34 = arith.constant 0 : index
    %67 = vector.load %arg4[%c32, %c0_34] : memref<80x1xf32, #tpu.memory_space<vmem>>, vector<16x1xf32>
    %68 = arith.addf %66, %67 : vector<16x1xf32>
    %cst_35 = arith.constant 0.000000e+00 : f32
    %69 = vector.broadcast %cst_35 : f32 to vector<16x1xf32>
    %70 = arith.maximumf %68, %69 : vector<16x1xf32>
    %c0_36 = arith.constant 0 : index
    %c0_37 = arith.constant 0 : index
    %71 = vector.load %arg6[%c0_36, %c0_37] : memref<16x16xf32, #tpu.memory_space<vmem>>, vector<16x16xf32>
    %cst_38 = arith.constant dense<0.000000e+00> : vector<16x1xf32>
    %72 = tpu.matmul %71, %70, %cst_38 {dimension_numbers = #tpu.dot_dimension_numbers<[1], [0], [0], [1], [0, 0, 1, 1], [], []>} : vector<16x16xf32>, vector<16x1xf32>, vector<16x1xf32> -> vector<16x1xf32>
    %c48 = arith.constant 48 : index
    %c0_39 = arith.constant 0 : index
    %73 = vector.load %arg4[%c48, %c0_39] : memref<80x1xf32, #tpu.memory_space<vmem>>, vector<16x1xf32>
    %74 = arith.addf %72, %73 : vector<16x1xf32>
    %cst_40 = arith.constant 3.000000e+00 : f32
    %75 = vector.broadcast %cst_40 : f32 to vector<16x1xf32>
    %76 = arith.addf %74, %75 : vector<16x1xf32>
    %cst_41 = arith.constant 0.000000e+00 : f32
    %cst_42 = arith.constant 6.000000e+00 : f32
    %77 = vector.broadcast %cst_41 : f32 to vector<16x1xf32>
    %78 = arith.maximumf %77, %76 : vector<16x1xf32>
    %79 = vector.broadcast %cst_42 : f32 to vector<16x1xf32>
    %80 = arith.minimumf %79, %78 : vector<16x1xf32>
    %cst_43 = arith.constant 0.166666672 : f32
    %81 = vector.broadcast %cst_43 : f32 to vector<16x1xf32>
    %82 = arith.mulf %80, %81 : vector<16x1xf32>
    %83 = vector.broadcast %82 : vector<16x1xf32> to vector<16x256xf32>
    %84 = arith.mulf %60, %83 : vector<16x256xf32>
    %cst_44 = arith.constant 3.000000e+00 : f32
    %85 = vector.broadcast %cst_44 : f32 to vector<16x256xf32>
    %86 = arith.addf %84, %85 : vector<16x256xf32>
    %cst_45 = arith.constant 0.000000e+00 : f32
    %cst_46 = arith.constant 6.000000e+00 : f32
    %87 = vector.broadcast %cst_45 : f32 to vector<16x256xf32>
    %88 = arith.maximumf %87, %86 : vector<16x256xf32>
    %89 = vector.broadcast %cst_46 : f32 to vector<16x256xf32>
    %90 = arith.minimumf %89, %88 : vector<16x256xf32>
    %cst_47 = arith.constant 0.166666672 : f32
    %91 = vector.broadcast %cst_47 : f32 to vector<16x256xf32>
    %92 = arith.mulf %90, %91 : vector<16x256xf32>
    %93 = arith.mulf %84, %92 : vector<16x256xf32>
    %c0_48 = arith.constant 0 : index
    %c0_49 = arith.constant 0 : index
    %94 = vector.load %arg7[%c0_48, %c0_49] : memref<16x16xf32, #tpu.memory_space<vmem>>, vector<16x16xf32>
    %cst_50 = arith.constant dense<0.000000e+00> : vector<16x256xf32>
    %95 = tpu.matmul %94, %93, %cst_50 {dimension_numbers = #tpu.dot_dimension_numbers<[1], [0], [0], [1], [0, 0, 1, 1], [], []>} : vector<16x16xf32>, vector<16x256xf32>, vector<16x256xf32> -> vector<16x256xf32>
    %c64 = arith.constant 64 : index
    %c0_51 = arith.constant 0 : index
    %96 = vector.load %arg4[%c64, %c0_51] : memref<80x1xf32, #tpu.memory_space<vmem>>, vector<16x1xf32>
    %97 = vector.broadcast %96 : vector<16x1xf32> to vector<16x256xf32>
    %98 = arith.addf %95, %97 : vector<16x256xf32>
    %99 = arith.addf %98, %0 : vector<16x256xf32>
    %c0_52 = arith.constant 0 : index
    %c0_53 = arith.constant 0 : index
    %100 = vector.load %arg8[%c0_52, %c0_53] : memref<16x256xf32, #tpu.memory_space<vmem>>, vector<16x256xf32>
    tpu.vector_store %arg8[%c0_52, %c0_53], %99 {strides = array<i32>} : memref<16x256xf32, #tpu.memory_space<vmem>>, vector<16x256xf32>,
    return
  }
  func.func @transform_0(%arg0: i32) -> (i32, i32) {
    %c0_i32 = arith.constant 0 : i32
    %c0_i32_0 = arith.constant 0 : i32
    return %arg0, %c0_i32 : i32, i32
  }
  func.func @transform_1(%arg0: i32) -> (i32, i32) {
    %c0_i32 = arith.constant 0 : i32
    %c0_i32_0 = arith.constant 0 : i32
    %c0_i32_1 = arith.constant 0 : i32
    return %c0_i32, %c0_i32_0 : i32, i32
  }
  func.func @transform_2(%arg0: i32) -> (i32, i32, i32) {
    %c0_i32 = arith.constant 0 : i32
    %c0_i32_0 = arith.constant 0 : i32
    %c0_i32_1 = arith.constant 0 : i32
    %c0_i32_2 = arith.constant 0 : i32
    return %c0_i32, %c0_i32_0, %c0_i32_1 : i32, i32, i32
  }
  func.func @transform_3(%arg0: i32) -> (i32, i32) {
    %c0_i32 = arith.constant 0 : i32
    %c0_i32_0 = arith.constant 0 : i32
    %c0_i32_1 = arith.constant 0 : i32
    return %c0_i32, %c0_i32_0 : i32, i32
  }
  func.func @transform_4(%arg0: i32) -> (i32, i32) {
    %c0_i32 = arith.constant 0 : i32
    %c0_i32_0 = arith.constant 0 : i32
    %c0_i32_1 = arith.constant 0 : i32
    return %c0_i32, %c0_i32_0 : i32, i32
  }
  func.func @transform_5(%arg0: i32) -> (i32, i32) {
    %c0_i32 = arith.constant 0 : i32
    %c0_i32_0 = arith.constant 0 : i32
    %c0_i32_1 = arith.constant 0 : i32
    return %c0_i32, %c0_i32_0 : i32, i32
  }
  func.func @transform_6(%arg0: i32) -> (i32, i32) {
    %c0_i32 = arith.constant 0 : i32
    %c0_i32_0 = arith.constant 0 : i32
    %c0_i32_1 = arith.constant 0 : i32
    return %c0_i32, %c0_i32_0 : i32, i32
  }
  func.func @transform_7(%arg0: i32) -> (i32, i32) {
    %c0_i32 = arith.constant 0 : i32
    %c0_i32_0 = arith.constant 0 : i32
    return %arg0, %c0_i32 : i32, i32
  }
}

</mosaic_0001>

<bundles_post_ra>
// kernel: tpu_custom_call.1
= control target key start
LH: loop header
LB: loop body
LE: loop exit
PB: predicated region body
PF: predicated region fallthrough
CT: control target
= control target key end

     0   :  { %12 = vsyncpa [#allocation3], 0  ;;  %s1091_s0 = inlined_call_operand.vmem [shape: f32[16,256], index: 0, kind: input, shape index: {}]   ;;  %s1092_s1 = inlined_call_operand.vmem [shape: f32[16,16], index: 1, kind: input, shape index: {}]   ;;  %s1093_s2 = inlined_call_operand.hbm [shape: f32[9,16,256], index: 2, kind: input, shape index: {}]   ;;  %s1094_s3 = inlined_call_operand.vmem [shape: f32[80,1], index: 3, kind: input, shape index: {}]   ;;  %s1095_s4 = inlined_call_operand.vmem [shape: f32[16,16], index: 4, kind: input, shape index: {}]   ;;  %s1096_s5 = inlined_call_operand.vmem [shape: f32[16,16], index: 5, kind: input, shape index: {}]   ;;  %s1097_s6 = inlined_call_operand.hbm [shape: f32[16,16], index: 6, kind: input, shape index: {}]   ;;  %s1098_s7 = inlined_call_operand.hbm [shape: f32[16,256], index: 7, kind: output, shape index: {}]  }
   0x1   :  { %13 = vsyncpa [#allocation6], 0 }
   0x2   :  { %14 = vsyncpa [#allocation4], 0  ;;  %s23_s26 = sshll.u32 %s1093_s2, 4  ;;  %s718_s27 = smov [#allocation2]   ;;  %s24_s26 = int_to_ptr.hbm [resolvable:$true] %s23_s26 }
   0x3   :  { %s25_s28 = sshll.u32 %s718_s27, 4  ;;  %s42_s8 = sshll.u32 %s1097_s6, 4  ;;  %s26_s28 = int_to_ptr.vmem [resolvable:$true] %s25_s28  ;;  %s43_s8 = int_to_ptr.hbm [resolvable:$true] %s42_s8 }
   0x4   :  { %s719_s9 = smov 256   ;;  %s720_s10 = smov 16  }
   0x5   :  { %31 = dma.hbm_to_vmem [thread:$0]  %s24_s26, 4608, %s26_s28, [#allocation3], %s719_s9, %s719_s9, %s720_s10  }
   0x6   :  { %s721_s11 = smov [#allocation5]   ;;  %s722_s13 = smov 128  }
   0x7   :  { %s44_s12 = sshll.u32 %s721_s11, 4  ;;  %s723_s2 = smov 8   ;;  %s45_s12 = int_to_ptr.vmem [resolvable:$true] %s44_s12 }
   0x8   :  { %50 = dma.hbm_to_vmem [thread:$0]  %s43_s8, 256, %s45_s12, [#allocation6], %s722_s13, %s722_s13, %s723_s2  }
   0x9   :  { %712 = dma.done.wait [#allocation3], 4608  }
   0xa   :  { %713 = vsyncadd [#allocation3], 4294962688 }
   0xb   :  { %714 = dma.done.wait [#allocation6], 256  }
   0xc   :  { %715 = vsyncadd [#allocation6], 4294967040  ;;  %v724_v0 = vmov 0   ;;  %v66_v1 = vld [vmem:[%s1094_s3 + $0x8] sm:$0xff]  ;;  %v789_v2 = vld [vmem:[%s1091_s0 + $0x10] sm:$0xff]  ;;  %vm77_vm0 = vcmask 130048   ;;  %v171_v58 = vlaneseq }
   0xd   :  { %635 = vset.pattern.permute.xlu0 %v724_v0  ;;  %636 = vset.pattern.permute.xlu1 %v724_v0  ;;  %v794_v3 = vld [vmem:[%s1091_s0 + $0x18] sm:$0xff]  ;;  %v800_v4 = vld [vmem:[%s1091_s0] sm:$0xff]  ;;  %v805_v5 = vld [vmem:[%s1091_s0 + $0x8] sm:$0xff]  ;;  %s726_s28 = smov 15   ;;  %s727_s29 = smov 1  }
   0xe   :  { %637 = vset.pattern.permute.xlu2 %v724_v0  ;;  %74 = vperm.xlu0 %635, %v66_v1   ;;  %v63_v6 = vld [vmem:[%s1092_s1] sm:$0xff]  ;;  %v64_v7 = vld [vmem:[%s1092_s1 + $0x8] sm:$0xff]  ;;  %s725_s1 = smov 17   ;;  %s728_s30 = smov 113   ;;  %v368_v39 = vld [vmem:[%s1094_s3 + $0x10] sm:$0xff]  ;;  %v909_v60 = vand.u32 127, %v171_v58 }
   0xf   :  { %98 = vmatpush.msra.mxu0 %v789_v2  ;;  %615 = vmatpush.msra.mxu2 %v789_v2  ;;  %v65_v8 = vld [vmem:[%s1094_s3] sm:$0xff]  ;;  %s729_s8 = smov 127   ;;  %s730_s11 = smov 112   ;;  %v369_v40 = vld [vmem:[%s1094_s3 + $0x18] sm:$0xff]  ;;  %v160_v0 = vld [vmem:[#allocation2 + $0x8] sm:$0xff] }
  0x10   :  { %121 = vmatpush.msra.mxu1 %v794_v3  ;;  %617 = vmatpush.msra.mxu3 %v794_v3  ;;  %s731_s12 = smov 111   ;;  %vm173_vm1 = vcmp.lt.s32.totalorder %v909_v60, 17  ;;  %vm199_vm2 = vcmp.lt.s32.totalorder %v909_v60, 16  ;;  %v159_v63 = vld [vmem:[#allocation2] sm:$0xff]  ;;  %vm225_vm3 = vcmp.lt.s32.totalorder %v909_v60, 15  ;;  %vm251_vm4 = vcmp.lt.s32.totalorder %v909_v60, 1 }
  0x11   :  { %99 = vmatpush.msra.mxu0 %v800_v4  ;;  %616 = vmatpush.msra.mxu2 %v800_v4  ;;  %vm277_vm5 = vcmp.lt.s32.totalorder %v909_v60, 127  ;;  %vm303_vm6 = vcmp.lt.s32.totalorder %v909_v60, 113  ;;  %vm329_vm7 = vcmp.lt.s32.totalorder %v909_v60, 112  ;;  %vm355_vm8 = vcmp.lt.s32.totalorder %v909_v60, 111  ;;  %s589_s13 = sshll.u32 %s1098_s7, 4  ;;  %s590_s13 = int_to_ptr.hbm [resolvable:$true] %s589_s13 }
  0x12   :  { %122 = vmatpush.msra.mxu1 %v805_v5  ;;  %618 = vmatpush.msra.mxu3 %v805_v5 }
  0x13   :  { %603 = vmatmul.msk.f32.vlgmr.msra.gmra.mxu0 %vm77_vm0, %v63_v6  ;;  %604 = vmatmul.msk.f32.vlgmr.msra.gmra.mxu2 %vm77_vm0, %v64_v7 }
  0x14   :  { %605 = vmatmul.msk.f32.vlgmr.msra.gmra.mxu1 %vm77_vm0, %v63_v6  ;;  %606 = vmatmul.msk.f32.vlgmr.msra.gmra.mxu3 %vm77_vm0, %v64_v7 }
  0x16   :  { %69 = vperm.xlu0 %635, %v65_v8   ;;  %v151_v8 = vld [vmem:[#allocation2 + $0x80] sm:$0xff] }
  0x80   :  { %v75_v9 = vpop.permute.xlu0 %74 }
  0x88   :  { %v70_v10 = vpop.permute.xlu0 %69 }
  0x90   :  { %v101_v11 = vpop.f32.mrf.mxu0 }
  0x91   :  { %v102_v12 = vadd.f32 %v101_v11, %v70_v10  ;;  %v124_v13 = vpop.f32.mrf.mxu1  ;;  %v152_v11 = vld [vmem:[#allocation2 + $0x88] sm:$0xff] }
  0x92   :  { %v125_v14 = vadd.f32 %v124_v13, %v70_v10  ;;  %v188_v13 = vld [vmem:[#allocation2 + $0x28] sm:$0xff] }
  0x93   :  { %v130_v15 = vadd.f32 3.0, %v102_v12 }
  0x94   :  { %v131_v16 = vadd.f32 3.0, %v125_v14 }
  0x95   :  { %v134_v17 = vmax.f32 %v130_v15, 0.0 }
  0x96   :  { %v135_v18 = vmax.f32 %v131_v16, 0.0  ;;  %v104_v25 = vpop.f32.mrf.mxu2 }
  0x97   :  { %v138_v19 = vmin.f32 %v134_v17, 6.0  ;;  %v105_v26 = vadd.f32 %v104_v25, %v75_v9  ;;  %v127_v28 = vpop.f32.mrf.mxu3 }
  0x98   :  { %v139_v20 = vmin.f32 %v135_v18, 6.0  ;;  %v128_v30 = vadd.f32 %v127_v28, %v75_v9  ;;  %v213_v18 = vld [vmem:[#allocation2 + $0x40] sm:$0xff] }
  0x99   :  { %v142_v21 = vmul.f32 0.16666667, %v138_v19  ;;  %v132_v27 = vadd.f32 3.0, %v105_v26  ;;  %v214_v19 = vld [vmem:[#allocation2 + $0x48] sm:$0xff] }
  0x9a   :  { %v143_v22 = vmul.f32 0.16666667, %v139_v20  ;;  %v133_v32 = vadd.f32 3.0, %v128_v30 }
  0x9b   :  { %v827_v23 = vmul.f32 %v142_v21, %v102_v12  ;;  %v136_v29 = vmax.f32 %v132_v27, 0.0  ;;  %v187_v12 = vld [vmem:[#allocation2 + $0x20] sm:$0xff] }
  0x9c   :  { %v829_v24 = vmul.f32 %v143_v22, %v125_v14  ;;  %v137_v34 = vmax.f32 %v133_v32, 0.0 }
  0x9d   :  { %163 = vrot.lane.b32.xlu2 %v827_v23, %s725_s1  ;;  %v140_v31 = vmin.f32 %v136_v29, 6.0  ;;  %v155_v25 = vmul.f32 %v151_v8, %v827_v23 }
  0x9e   :  { %221 = vrot.lane.b32.xlu1 %v829_v24, %s726_s28  ;;  %195 = vrot.lane.b32.xlu0 %v829_v24, %s720_s10  ;;  %v141_v36 = vmin.f32 %v137_v34, 6.0  ;;  %v156_v22 = vmul.f32 %v152_v11, %v829_v24  ;;  %v239_v34 = vld [vmem:[#allocation2 + $0x60] sm:$0xff]  ;;  %v161_v11 = vld [vmem:[#allocation2 + $0x10] sm:$0xff] }
  0x9f   :  { %v144_v33 = vmul.f32 0.16666667, %v140_v31 }
  0xa0   :  { %v145_v37 = vmul.f32 0.16666667, %v141_v36  ;;  %v240_v36 = vld [vmem:[#allocation2 + $0x68] sm:$0xff] }
  0xa1   :  { %v853_v35 = vmul.f32 %v144_v33, %v105_v26 }
  0xa2   :  { %v860_v38 = vmul.f32 %v145_v37, %v128_v30 }
  0xa5   :  { %167 = vrot.lane.b32.xlu2 %v829_v24, %s725_s1 }
  0xa6   :  { %243 = vrot.lane.b32.xlu1 %v827_v23, %s727_s29  ;;  %217 = vrot.lane.b32.xlu0 %v827_v23, %s726_s28 }
  0xad   :  { %191 = vrot.lane.b32.xlu2 %v827_v23, %s720_s10 }
  0xae   :  { %299 = vrot.lane.b32.xlu1 %v829_v24, %s728_s30  ;;  %273 = vrot.lane.b32.xlu0 %v829_v24, %s729_s8 }
  0xb5   :  { %247 = vrot.lane.b32.xlu2 %v829_v24, %s727_s29 }
  0xb6   :  { %321 = vrot.lane.b32.xlu1 %v827_v23, %s730_s11  ;;  %295 = vrot.lane.b32.xlu0 %v827_v23, %s728_s30 }
  0xbd   :  { %269 = vrot.lane.b32.xlu2 %v827_v23, %s729_s8 }
  0xbe   :  { %165 = vrot.lane.b32.xlu1 %v853_v35, %s725_s1  ;;  %193 = vrot.lane.b32.xlu0 %v853_v35, %s720_s10 }
  0xc5   :  { %325 = vrot.lane.b32.xlu2 %v829_v24, %s730_s11 }
  0xc6   :  { %169 = vrot.lane.b32.xlu1 %v860_v38, %s725_s1  ;;  %249 = vrot.lane.b32.xlu0 %v860_v38, %s727_s29 }
  0xcd   :  { %223 = vrot.lane.b32.xlu2 %v860_v38, %s726_s28 }
  0xce   :  { %197 = vrot.lane.b32.xlu1 %v860_v38, %s720_s10  ;;  %271 = vrot.lane.b32.xlu0 %v853_v35, %s729_s8 }
  0xd5   :  { %245 = vrot.lane.b32.xlu2 %v853_v35, %s727_s29 }
  0xd6   :  { %219 = vrot.lane.b32.xlu1 %v853_v35, %s726_s28  ;;  %327 = vrot.lane.b32.xlu0 %v860_v38, %s730_s11 }
  0xdd   :  { %301 = vrot.lane.b32.xlu2 %v860_v38, %s728_s30 }
  0xde   :  { %275 = vrot.lane.b32.xlu1 %v860_v38, %s729_s8  ;;  %349 = vrot.lane.b32.xlu0 %v853_v35, %s731_s12 }
  0xe5   :  { %323 = vrot.lane.b32.xlu2 %v853_v35, %s730_s11 }
  0xe6   :  { %297 = vrot.lane.b32.xlu1 %v853_v35, %s728_s30  ;;  %351 = vrot.lane.b32.xlu0 %v829_v24, %s731_s12 }
  0xed   :  { %347 = vrot.lane.b32.xlu2 %v827_v23, %s731_s12 }
  0xee   :  { %353 = vrot.lane.b32.xlu1 %v860_v38, %s731_s12 }
  0xf5   :  { %372 = vperm.xlu2 %637, %v368_v39  }
  0xf6   :  { %377 = vperm.xlu1 %636, %v369_v40   ;;  %v265_v40 = vld [vmem:[#allocation2 + $0xa0] sm:$0xff] }
  0xf7   :  { %v164_v41 = vpop.permute.xlu2 %163 }
  0xff   :  { %v168_v42 = vpop.permute.xlu2 %167 }
 0x100   :  { %v174_v1 = vsel %vm173_vm1, %v164_v41, %v168_v42  ;;  %v176_v6 = vsel %vm173_vm1, %v168_v42, %v164_v41  ;;  %v266_v41 = vld [vmem:[#allocation2 + $0xa8] sm:$0xff] }
 0x101   :  { %v178_v16 = vmul.f32 %v176_v6, %v159_v63  ;;  %v179_v17 = vmul.f32 %v174_v1, %v160_v0  ;;  %v291_v0 = vld [vmem:[#allocation2 + $0xc0] sm:$0xff]  ;;  %v292_v1 = vld [vmem:[#allocation2 + $0xc8] sm:$0xff] }
 0x103   :  { %v182_v28 = vadd.f32 %v178_v16, %v155_v25  ;;  %v183_v29 = vadd.f32 %v179_v17, %v156_v22  ;;  %v153_v17 = vld [vmem:[#allocation2 + $0x90] sm:$0xff] }
 0x107   :  { %v192_v43 = vpop.permute.xlu2 %191 }
 0x10f   :  { %v248_v44 = vpop.permute.xlu2 %247 }
 0x110   :  { %v222_v45 = vpop.permute.xlu1 %221  ;;  %v196_v46 = vpop.permute.xlu0 %195 }
 0x111   :  { %v200_v14 = vsel %vm199_vm2, %v192_v43, %v196_v46  ;;  %v202_v15 = vsel %vm199_vm2, %v196_v46, %v192_v43 }
 0x112   :  { %v204_v26 = vmul.f32 %v202_v15, %v187_v12  ;;  %v205_v27 = vmul.f32 %v200_v14, %v188_v13  ;;  %v162_v12 = vld [vmem:[#allocation2 + $0x18] sm:$0xff] }
 0x114   :  { %v208_v32 = vadd.f32 %v204_v26, %v182_v28  ;;  %v209_v33 = vadd.f32 %v205_v27, %v183_v29  ;;  %v318_v26 = vld [vmem:[#allocation2 + $0xe8] sm:$0xff] }
 0x117   :  { %v270_v47 = vpop.permute.xlu2 %269 }
 0x118   :  { %v244_v48 = vpop.permute.xlu1 %243  ;;  %v218_v49 = vpop.permute.xlu0 %217 }
 0x119   :  { %v226_v20 = vsel %vm225_vm3, %v218_v49, %v222_v45  ;;  %v228_v21 = vsel %vm225_vm3, %v222_v45, %v218_v49  ;;  %v252_v37 = vsel %vm251_vm4, %v244_v48, %v248_v44  ;;  %v254_v23 = vsel %vm251_vm4, %v248_v44, %v244_v48 }
 0x11a   :  { %v230_v30 = vmul.f32 %v228_v21, %v213_v18  ;;  %v231_v31 = vmul.f32 %v226_v20, %v214_v19  ;;  %v256_v58 = vmul.f32 %v254_v23, %v239_v34  ;;  %v257_v63 = vmul.f32 %v252_v37, %v240_v36  ;;  %v189_v19 = vld [vmem:[#allocation2 + $0x30] sm:$0xff]  ;;  %v190_v20 = vld [vmem:[#allocation2 + $0x38] sm:$0xff] }
 0x11c   :  { %v234_v46 = vadd.f32 %v230_v30, %v208_v32  ;;  %v235_v49 = vadd.f32 %v231_v31, %v209_v33  ;;  %v157_v31 = vmul.f32 %v153_v17, %v853_v35  ;;  %v216_v32 = vld [vmem:[#allocation2 + $0x58] sm:$0xff] }
 0x11e   :  { %v261_v8 = vadd.f32 %v257_v63, %v235_v49  ;;  %v343_v63 = vld [vmem:[#allocation2 + $0x100] sm:$0xff] }
 0x11f   :  { %v895_v52 = vpop.permute.xlu2 %325 }
 0x120   :  { %v893_v50 = vpop.permute.xlu1 %299  ;;  %v274_v51 = vpop.permute.xlu0 %273 }
 0x121   :  { %v278_v42 = vsel %vm277_vm5, %v270_v47, %v274_v51  ;;  %v280_v43 = vsel %vm277_vm5, %v274_v51, %v270_v47  ;;  %v260_v51 = vadd.f32 %v256_v58, %v234_v46  ;;  %v241_v46 = vld [vmem:[#allocation2 + $0x70] sm:$0xff] }
 0x122   :  { %v282_v44 = vmul.f32 %v278_v42, %v265_v40  ;;  %v283_v48 = vmul.f32 %v280_v43, %v266_v41 }
 0x124   :  { %v287_v18 = vadd.f32 %v283_v48, %v261_v8 }
 0x127   :  { %v901_v55 = vpop.permute.xlu2 %223 }
 0x128   :  { %v897_v53 = vpop.permute.xlu1 %321  ;;  %v899_v54 = vpop.permute.xlu0 %295 }
 0x129   :  { %v304_v6 = vsel %vm303_vm6, %v899_v54, %v893_v50  ;;  %v306_v47 = vsel %vm303_vm6, %v893_v50, %v899_v54  ;;  %v154_v50 = vld [vmem:[#allocation2 + $0x98] sm:$0xff]  ;;  %v286_v54 = vadd.f32 %v282_v44, %v260_v51  ;;  %v330_v27 = vsel %vm329_vm7, %v897_v53, %v895_v52  ;;  %v344_v44 = vld [vmem:[#allocation2 + $0x108] sm:$0xff] }
 0x12a   :  { %v308_v15 = vmul.f32 %v304_v6, %v291_v0  ;;  %v309_v16 = vmul.f32 %v306_v47, %v292_v1  ;;  %v332_v28 = vsel %vm329_vm7, %v895_v52, %v897_v53  ;;  %v267_v6 = vld [vmem:[#allocation2 + $0xb0] sm:$0xff]  ;;  %v268_v47 = vld [vmem:[#allocation2 + $0xb8] sm:$0xff] }
 0x12b   :  { %v335_v41 = vmul.f32 %v332_v28, %v318_v26 }
 0x12c   :  { %v312_v36 = vadd.f32 %v308_v15, %v286_v54  ;;  %v313_v37 = vadd.f32 %v309_v16, %v287_v18  ;;  %v294_v16 = vld [vmem:[#allocation2 + $0xd8] sm:$0xff] }
 0x12e   :  { %v339_v48 = vadd.f32 %v335_v41, %v313_v37  ;;  %v346_v37 = vld [vmem:[#allocation2 + $0x118] sm:$0xff] }
 0x12f   :  { %v907_v59 = vpop.permute.xlu2 %245 }
 0x130   :  { %v903_v56 = vpop.permute.xlu1 %165  ;;  %v905_v57 = vpop.permute.xlu0 %193 }
 0x137   :  { %v921_v7 = vpop.permute.xlu2 %301 }
 0x138   :  { %v911_v61 = vpop.permute.xlu1 %169  ;;  %v913_v62 = vpop.permute.xlu0 %249 }
 0x139   :  { %v175_v13 = vsel %vm173_vm1, %v903_v56, %v911_v61  ;;  %v177_v14 = vsel %vm173_vm1, %v911_v61, %v903_v56  ;;  %v317_v61 = vld [vmem:[#allocation2 + $0xe0] sm:$0xff]  ;;  %v253_v0 = vsel %vm251_vm4, %v907_v59, %v913_v62  ;;  %v255_v1 = vsel %vm251_vm4, %v913_v62, %v907_v59  ;;  %v293_v62 = vld [vmem:[#allocation2 + $0xd0] sm:$0xff] }
 0x13a   :  { %v180_v29 = vmul.f32 %v177_v14, %v161_v11  ;;  %v181_v30 = vmul.f32 %v175_v13, %v162_v12  ;;  %v334_v40 = vmul.f32 %v330_v27, %v317_v61  ;;  %v258_v18 = vmul.f32 %v255_v1, %v241_v46 }
 0x13c   :  { %v184_v35 = vadd.f32 %v180_v29, %v157_v31 }
 0x13f   :  { %v951_v45 = vpop.permute.xlu2 %323 }
 0x140   :  { %v924_v9 = vpop.permute.xlu1 %197  ;;  %v926_v10 = vpop.permute.xlu0 %271 }
 0x141   :  { %v201_v21 = vsel %vm199_vm2, %v905_v57, %v924_v9  ;;  %v203_v22 = vsel %vm199_vm2, %v924_v9, %v905_v57  ;;  %v158_v57 = vmul.f32 %v154_v50, %v860_v38  ;;  %v215_v9 = vld [vmem:[#allocation2 + $0x50] sm:$0xff] }
 0x142   :  { %v206_v23 = vmul.f32 %v203_v22, %v189_v19  ;;  %v207_v52 = vmul.f32 %v201_v21, %v190_v20 }
 0x143   :  { %v185_v42 = vadd.f32 %v181_v30, %v158_v57  ;;  %v319_v57 = vld [vmem:[#allocation2 + $0xf0] sm:$0xff] }
 0x144   :  { %v210_v49 = vadd.f32 %v206_v23, %v184_v35 }
 0x145   :  { %v211_v58 = vadd.f32 %v207_v52, %v185_v42 }
 0x147   :  { %v348_v53 = vpop.permute.xlu2 %347 }
 0x148   :  { %v220_v24 = vpop.permute.xlu1 %219  ;;  %v944_v39 = vpop.permute.xlu0 %327 }
 0x149   :  { %v227_v33 = vsel %vm225_vm3, %v220_v24, %v901_v55  ;;  %v229_v34 = vsel %vm225_vm3, %v901_v55, %v220_v24  ;;  %v338_v55 = vadd.f32 %v334_v40, %v312_v36  ;;  %v242_v24 = vld [vmem:[#allocation2 + $0x78] sm:$0xff]  ;;  %v345_v36 = vld [vmem:[#allocation2 + $0x110] sm:$0xff] }
 0x14a   :  { %v232_v38 = vmul.f32 %v229_v34, %v215_v9  ;;  %v233_v43 = vmul.f32 %v227_v33, %v216_v32  ;;  %v259_v19 = vmul.f32 %v253_v0, %v242_v24  ;;  %v320_v32 = vld [vmem:[#allocation2 + $0xf8] sm:$0xff]  ;;  %v331_v33 = vsel %vm329_vm7, %v951_v45, %v944_v39 }
 0x14b   :  { %v333_v34 = vsel %vm329_vm7, %v944_v39, %v951_v45  ;;  %v336_v42 = vmul.f32 %v331_v33, %v319_v57  ;;  %v732_v24 = vmov 256.0  }
 0x14c   :  { %v236_v13 = vadd.f32 %v232_v38, %v210_v49  ;;  %v237_v14 = vadd.f32 %v233_v43, %v211_v58  ;;  %v337_v38 = vmul.f32 %v333_v34, %v320_v32  ;;  %638 = vrcp.f32 %v732_v24  ;;  %v511_v34 = vld [vmem:[%s1094_s3 + $0x40] sm:$0xff] }
 0x14e   :  { %v262_v26 = vadd.f32 %v258_v18, %v236_v13  ;;  %v263_v27 = vadd.f32 %v259_v19, %v237_v14  ;;  %v399_v13 = vld [vmem:[%s1095_s4] sm:$0xff]  ;;  %v400_v14 = vld [vmem:[%s1095_s4 + $0x8] sm:$0xff] }
 0x14f   :  { %v373_v22 = vpop.permute.xlu2 %372  ;;  %v434_v18 = vld [vmem:[%s1096_s5] sm:$0xff]  ;;  %v435_v19 = vld [vmem:[%s1096_s5 + $0x8] sm:$0xff] }
 0x150   :  { %v276_v25 = vpop.permute.xlu1 %275  ;;  %v978_v56 = vpop.permute.xlu0 %349 }
 0x151   :  { %v279_v51 = vsel %vm277_vm5, %v926_v10, %v276_v25  ;;  %v281_v8 = vsel %vm277_vm5, %v276_v25, %v926_v10 }
 0x152   :  { %v284_v20 = vmul.f32 %v279_v51, %v267_v6  ;;  %v285_v21 = vmul.f32 %v281_v8, %v268_v47  ;;  %v639_v0 = vpop.eup %638 }
 0x153   :  { %v391_v1 = vmul.f32 256.0, %v639_v0  ;;  %vm395_vm9 = vweird.f32 %v639_v0 }
 0x154   :  { %v288_v9 = vadd.f32 %v284_v20, %v262_v26 }
 0x155   :  { %v392_v60 = vsub.f32 1.0, %v391_v1 }
 0x158   :  { %v298_v11 = vpop.permute.xlu1 %297  ;;  %v352_v12 = vpop.permute.xlu0 %351 }
 0x159   :  { %v356_v15 = vsel %vm355_vm8, %v348_v53, %v352_v12  ;;  %v358_v59 = vsel %vm355_vm8, %v352_v12, %v348_v53  ;;  %v305_v17 = vsel %vm303_vm6, %v298_v11, %v921_v7  ;;  %v307_v10 = vsel %vm303_vm6, %v921_v7, %v298_v11 }
 0x15a   :  { %v360_v50 = vmul.f32 %v356_v15, %v343_v63  ;;  %v361_v54 = vmul.f32 %v358_v59, %v344_v44  ;;  %v310_v28 = vmul.f32 %v305_v17, %v293_v62  ;;  %v311_v29 = vmul.f32 %v307_v10, %v294_v16  ;;  %v401_v59 = vld [vmem:[%s1094_s3 + $0x20] sm:$0xff]  ;;  %v402_v62 = vld [vmem:[%s1094_s3 + $0x28] sm:$0xff] }
 0x15b   :  { %v289_v7 = vadd.f32 %v285_v21, %v263_v27  ;;  %v436_v21 = vld [vmem:[%s1094_s3 + $0x30] sm:$0xff] }
 0x15c   :  { %v365_v25 = vadd.f32 %v361_v54, %v339_v48  ;;  %v364_v61 = vadd.f32 %v360_v50, %v338_v55  ;;  %v314_v53 = vadd.f32 %v310_v28, %v288_v9 }
 0x15d   :  { %v315_v40 = vadd.f32 %v311_v29, %v289_v7 }
 0x15e   :  { %v1021_v30 = vadd.f32 %v373_v22, %v364_v61  ;;  %v1023_v31 = vadd.f32 %v373_v22, %v365_v25  ;;  %v340_v43 = vadd.f32 %v336_v42, %v314_v53  ;;  %v437_v22 = vld [vmem:[%s1094_s3 + $0x38] sm:$0xff] }
 0x15f   :  { %v341_v46 = vadd.f32 %v337_v38, %v315_v40 }
 0x160   :  { %v354_v23 = vpop.permute.xlu1 %353  ;;  %v384_v52 = vadd.f32 %v1023_v31, %v1021_v30 }
 0x161   :  { %v357_v41 = vsel %vm355_vm8, %v978_v56, %v354_v23  ;;  %v359_v35 = vsel %vm355_vm8, %v354_v23, %v978_v56  ;;  %v393_v56 = vmul.f32 %v639_v0, %v392_v60 }
 0x162   :  { %385 = vadd.xlane.f32.xlu1 %v384_v52  ;;  %v362_v39 = vmul.f32 %v357_v41, %v345_v36  ;;  %v363_v45 = vmul.f32 %v359_v35, %v346_v37  ;;  %v512_v36 = vld [vmem:[%s1094_s3 + $0x48] sm:$0xff]  ;;  %s733_s3 = smov [#allocation7]  }
 0x163   :  { %v394_v6 = vadd.f32 %v639_v0, %v393_v56  ;;  %s587_s8 = sshll.u32 %s733_s3, 4  ;;  %s588_s8 = int_to_ptr.vmem [resolvable:$true] %s587_s8 }
 0x164   :  { %v366_v49 = vadd.f32 %v362_v39, %v340_v43  ;;  %v367_v58 = vadd.f32 %v363_v45, %v341_v46 }
 0x165   :  { %v396_v47 = vsel %vm395_vm9, %v639_v0, %v394_v6 }
 0x168   :  { %v378_v63 = vpop.permute.xlu1 %377 }
 0x169   :  { %v382_v44 = vadd.f32 %v378_v63, %v366_v49  ;;  %v383_v48 = vadd.f32 %v378_v63, %v367_v58 }
 0x16b   :  { %v387_v55 = vadd.f32 %v383_v48, %v382_v44 }
 0x16d   :  { %388 = vadd.xlane.f32.xlu0 %v387_v55 }
 0x1d5   :  { %v386_v51 = vpop.xlane.xlu1 %385 }
 0x1d6   :  { %v397_v12 = vmul.f32 %v396_v47, %v386_v51  ;;  %v509_v51 = vld [vmem:[#allocation5] sm:$0xff] }
 0x1e0   :  { %v389_v8 = vpop.xlane.xlu0 %388 }
 0x1e1   :  { %v398_v11 = vmul.f32 %v396_v47, %v389_v8 }
 0x1e3   :  { %423 = vmatpush.msrb.mxu2 %v398_v11 }
 0x1e5   :  { %424 = vmatpush.msrb.mxu2 %v397_v12 }
 0x1e6   :  { %607 = vmatmul.msk.f32.vlgmr.msrb.gmra.mxu2 %vm77_vm0, %v399_v13 }
 0x1ee   :  { %608 = vmatmul.msk.f32.gmra.mxu2 %vm77_vm0, %v400_v14 }
 0x269   :  { %v426_v15 = vpop.f32.mrf.mxu2 }
 0x26a   :  { %v427_v17 = vadd.f32 %v426_v15, %v401_v59 }
 0x26c   :  { %v432_v54 = vmax.f32 %v427_v17, 0.0 }
 0x271   :  { %v429_v16 = vpop.f32.mrf.mxu2 }
 0x272   :  { %v430_v10 = vadd.f32 %v429_v16, %v402_v62 }
 0x274   :  { %v433_v50 = vmax.f32 %v430_v10, 0.0 }
 0x276   :  { %458 = vmatpush.msrb.mxu3 %v433_v50 }
 0x278   :  { %459 = vmatpush.msrb.mxu3 %v432_v54 }
 0x279   :  { %609 = vmatmul.msk.f32.vlgmr.msrb.gmra.mxu3 %vm77_vm0, %v434_v18 }
 0x281   :  { %610 = vmatmul.msk.f32.gmra.mxu3 %vm77_vm0, %v435_v19 }
 0x2fc   :  { %v461_v20 = vpop.f32.mrf.mxu3 }
 0x2fd   :  { %v462_v61 = vadd.f32 %v461_v20, %v436_v21 }
 0x2ff   :  { %v467_v28 = vadd.f32 3.0, %v462_v61 }
 0x301   :  { %v469_v9 = vmax.f32 %v467_v28, 0.0 }
 0x303   :  { %v471_v32 = vmin.f32 %v469_v9, 6.0 }
 0x304   :  { %v464_v25 = vpop.f32.mrf.mxu3 }
 0x305   :  { %v465_v26 = vadd.f32 %v464_v25, %v437_v22  ;;  %v473_v33 = vmul.f32 0.16666667, %v471_v32 }
 0x307   :  { %v468_v27 = vadd.f32 3.0, %v465_v26 }
 0x309   :  { %v470_v29 = vmax.f32 %v468_v27, 0.0 }
 0x30b   :  { %v472_v57 = vmin.f32 %v470_v29, 6.0 }
 0x30d   :  { %v474_v7 = vmul.f32 0.16666667, %v472_v57 }
 0x30f   :  { %482 = vperm.xlu2 %637, %v474_v7  }
 0x317   :  { %477 = vperm.xlu2 %637, %v473_v33  }
 0x31f   :  { %515 = vperm.xlu2 %637, %v511_v34  }
 0x327   :  { %520 = vperm.xlu2 %637, %v512_v36  }
 0x369   :  { %v483_v37 = vpop.permute.xlu2 %482 }
 0x36a   :  { %v487_v23 = vmul.f32 %v483_v37, %v382_v44  ;;  %v488_v52 = vmul.f32 %v483_v37, %v383_v48 }
 0x36c   :  { %v491_v53 = vadd.f32 3.0, %v487_v23  ;;  %v492_v40 = vadd.f32 3.0, %v488_v52 }
 0x36e   :  { %v495_v41 = vmax.f32 %v491_v53, 0.0  ;;  %v496_v35 = vmax.f32 %v492_v40, 0.0 }
 0x370   :  { %v499_v42 = vmin.f32 %v495_v41, 6.0  ;;  %v500_v38 = vmin.f32 %v496_v35, 6.0 }
 0x371   :  { %v478_v39 = vpop.permute.xlu2 %477 }
 0x372   :  { %v485_v45 = vmul.f32 %v478_v39, %v1021_v30  ;;  %v486_v43 = vmul.f32 %v478_v39, %v1023_v31  ;;  %v503_v46 = vmul.f32 0.16666667, %v499_v42  ;;  %v504_v49 = vmul.f32 0.16666667, %v500_v38  ;;  %v510_v30 = vld [vmem:[#allocation5 + $0x8] sm:$0xff] }
 0x374   :  { %v489_v58 = vadd.f32 3.0, %v485_v45  ;;  %v490_v63 = vadd.f32 3.0, %v486_v43  ;;  %v507_v55 = vmul.f32 %v503_v46, %v487_v23  ;;  %v508_v24 = vmul.f32 %v504_v49, %v488_v52 }
 0x376   :  { %v493_v0 = vmax.f32 %v489_v58, 0.0  ;;  %v494_v44 = vmax.f32 %v490_v63, 0.0  ;;  %543 = vmatpush.msrb.mxu0 %v507_v55  ;;  %566 = vmatpush.msrb.mxu1 %v508_v24 }
 0x378   :  { %v497_v48 = vmin.f32 %v493_v0, 6.0  ;;  %v498_v1 = vmin.f32 %v494_v44, 6.0 }
 0x379   :  { %v516_v31 = vpop.permute.xlu2 %515 }
 0x37a   :  { %v501_v60 = vmul.f32 0.16666667, %v497_v48  ;;  %v502_v56 = vmul.f32 0.16666667, %v498_v1 }
 0x37c   :  { %v505_v6 = vmul.f32 %v501_v60, %v485_v45  ;;  %v506_v47 = vmul.f32 %v502_v56, %v486_v43 }
 0x37e   :  { %544 = vmatpush.msrb.mxu0 %v505_v6  ;;  %567 = vmatpush.msrb.mxu1 %v506_v47 }
 0x37f   :  { %611 = vmatmul.msk.f32.vlgmr.msrb.gmra.mxu0 %vm77_vm0, %v509_v51  ;;  %613 = vmatmul.msk.f32.vlgmr.msrb.gmra.mxu1 %vm77_vm0, %v509_v51 }
 0x381   :  { %v521_v59 = vpop.permute.xlu2 %520 }
 0x387   :  { %612 = vmatmul.msk.f32.gmra.mxu0 %vm77_vm0, %v510_v30  ;;  %614 = vmatmul.msk.f32.gmra.mxu1 %vm77_vm0, %v510_v30 }
 0x3fc   :  { %v546_v8 = vpop.f32.mrf.mxu0  ;;  %v569_v11 = vpop.f32.mrf.mxu1 }
 0x3fd   :  { %v547_v12 = vadd.f32 %v546_v8, %v516_v31  ;;  %v570_v13 = vadd.f32 %v569_v11, %v516_v31 }
 0x3ff   :  { %v575_v14 = vadd.f32 %v547_v12, %v800_v4  ;;  %v576_v15 = vadd.f32 %v570_v13, %v805_v5 }
 0x401   :  { %579 = vst [vmem:[#allocation7] sm:$0xff] %v575_v14 }
 0x402   :  { %580 = vst [vmem:[#allocation7 + $0x8] sm:$0xff] %v576_v15 }
 0x404   :  { %v549_v62 = vpop.f32.mrf.mxu0  ;;  %v572_v16 = vpop.f32.mrf.mxu1 }
 0x405   :  { %v550_v17 = vadd.f32 %v549_v62, %v521_v59  ;;  %v573_v10 = vadd.f32 %v572_v16, %v521_v59 }
 0x407   :  { %v577_v50 = vadd.f32 %v550_v17, %v789_v2  ;;  %v578_v54 = vadd.f32 %v573_v10, %v794_v3 }
 0x409   :  { %581 = vst [vmem:[#allocation7 + $0x10] sm:$0xff] %v577_v50 }
 0x40a   :  { %582 = vst [vmem:[#allocation7 + $0x18] sm:$0xff] %v578_v54 }
 0x40b   :  { %595 = dma.vmem_to_hbm [thread:$0]  %s588_s8, 512, %s590_s13, [#allocation4], %s719_s9, %s719_s9, %s720_s10  }
 0x40c   :  { %716 = dma.done.wait [#allocation4], 512  }
 0x40d   :  { %717 = vsyncadd [#allocation4], 4294966784 }
 0x40e   :  { %600 = vsyncpa [#allocation3], 1 }
 0x40f   :  { %601 = vsyncpa [#allocation6], 1 }
 0x410   :  { %602 = vsyncpa [#allocation4], 1 }

</bundles_post_ra>
